<compile_context>
chip_gen: v7x
topology: tpu7x:2x2x1
jax: 0.10.0
libtpu: 0.0.40
codegen_flags: <defaults>
</compile_context>

<pallas_src>
import functools

import jax
import jax.numpy as jnp
from jax import lax
from jax.experimental import pallas as pl
from jax.experimental.pallas import tpu as pltpu


# ---------------------------------------------------------------------------
# Generation-aware budgets.
# ---------------------------------------------------------------------------
def _tpu_caps():
    """Returns (vmem_limit_bytes, fused_slab_budget, per_step_target, multi_tc)."""
    try:
        vmem_cap = int(pltpu.get_tpu_info().vmem_capacity_bytes)
    except Exception:
        vmem_cap = None
    if vmem_cap is None:
        vmem_eff, multi_tc = 64 << 20, False           # conservative: safe on every gen
    else:
        vmem_eff = vmem_cap
        multi_tc = vmem_cap <= (96 << 20)              # v7x-like: 64 MiB/TC, 2 TCs/chip
    # ~100 MiB on 128-MiB chips (v5e/v6e), ~51 MiB on 64-MiB v7x.
    vmem_limit = min((vmem_eff * 4) // 5, 100 << 20)
    # The x block is double-buffered on input AND output -> ~4x block resident.
    slab_budget = max((vmem_limit - (2 << 20)) // 4, 1 << 20)
    # Per-step DMA block target: bigger on v7x to amortize fixed step overhead.
    step_target = (12 << 20) if multi_tc else (4 << 20)
    return vmem_limit, slab_budget, step_target, multi_tc


# ---------------------------------------------------------------------------
# Tile pickers / padding helpers.
# ---------------------------------------------------------------------------
def _pick_batch_block(n, per_batch_bytes, budget_bytes, target_bytes):
    """Divisor b of n: block fits budget, lands near the per-step target, and
    prefers >=4 (else >=2) grid steps so the pipeline reaches steady state and
    the parallel batch axis can be sharded across TensorCores."""
    divs = [d for d in range(1, n + 1) if n % d == 0]
    feas = [d for d in divs if d * per_batch_bytes <= budget_bytes] or [1]
    pref = feas
    for min_steps in (4, 2):
        cand = [d for d in feas if n // d >= min_steps]
        if cand:
            pref = cand
            break
    under = [d for d in pref if d * per_batch_bytes <= target_bytes]
    return max(under) if under else min(pref)


def _pick_l_tile(l_pad, col_bytes, cap_bytes, min_tiles=1):
    """Largest multiple-of-128 divisor of l_pad (l_pad % 128 == 0) whose tile
    stays under cap_bytes; optionally forces at least `min_tiles` tiles."""
    cap_cols = max(cap_bytes // max(col_bytes, 1), 128)
    if min_tiles > 1:
        cap_cols = min(cap_cols, max(((l_pad // min_tiles) // 128) * 128, 128))
    best, d = 128, 256
    while d <= min(cap_cols, l_pad):
        if l_pad % d == 0:
            best = d
        d += 128
    return best


def _pad_l(x, multiple=128):
    """Pad the L axis with zeros to a multiple of 128 (zeros are mean-neutral)."""
    l = x.shape[-1]
    l_pad = ((l + multiple - 1) // multiple) * multiple
    if l_pad != l:
        x = jnp.pad(x, ((0, 0), (0, 0), (0, l_pad - l)))
    return x, l_pad


# ---------------------------------------------------------------------------
# Kernels.
# ---------------------------------------------------------------------------
def _se_fused_kernel(x_ref, w_ref, b_ref, o_ref, *, inv_l):
    # x_ref/o_ref: (b, C, L); w_ref: (C, C) PyTorch Linear weight (out, in); b_ref: (1, C).
    x = x_ref[...]
    mean = jnp.sum(x, axis=-1, dtype=jnp.float32) * inv_l                 # (b, C) f32
    # mean @ W^T expressed through contraction dims: MXU consumes W natively,
    # no in-kernel XLU transpose.
    fc = lax.dot_general(mean, w_ref[...].astype(jnp.float32),
                         dimension_numbers=(((1,), (1,)), ((), ())),
                         preferred_element_type=jnp.float32)
    fc = fc + b_ref[...].astype(jnp.float32)
    o_ref[...] = (x + fc[:, :, None].astype(x.dtype)).astype(o_ref.dtype)


def _mean_fc_kernel(x_ref, w_ref, b_ref, fc_ref, *, inv_l):
    # Streaming f32 L-reduction with the (C,C) FC + bias fused into the
    # finalize branch (saves one XLA dispatch + (N,C) HBM round trip).
    # x_ref: (b, C, Lt); fc_ref: (b, C, 1) f32, resident across the L axis.
    j = pl.program_id(1)

    @pl.when(j == 0)
    def _():
        fc_ref[...] = jnp.zeros_like(fc_ref)

    fc_ref[...] += jnp.sum(x_ref[...], axis=-1, keepdims=True, dtype=jnp.float32)

    @pl.when(j == pl.num_programs(1) - 1)
    def _():
        mean = fc_ref[...][:, :, 0] * inv_l                               # (b, C) f32
        fc = lax.dot_general(mean, w_ref[...].astype(jnp.float32),
                             dimension_numbers=(((1,), (1,)), ((), ())),
                             preferred_element_type=jnp.float32)
        fc_ref[...] = (fc + b_ref[...].astype(jnp.float32))[:, :, None]


def _partial_sum_kernel(x_ref, ps_ref):
    # x_ref: (N, C, Lt); ps_ref: (1, N, C) f32 — one partial sum per L tile.
    ps_ref[...] = jnp.sum(x_ref[...], axis=-1, dtype=jnp.float32)[None]


def _add_kernel(x_ref, fc_ref, o_ref):
    # x_ref/o_ref: (b, C, Lt); fc_ref: (b, C, 1) f32 -> broadcast over lanes.
    x = x_ref[...]
    o_ref[...] = (x + fc_ref[...].astype(x.dtype)).astype(o_ref.dtype)


# ---------------------------------------------------------------------------
# pallas_call wrappers.
# ---------------------------------------------------------------------------
def _run_add(x_p, fc3, b, lt, vmem_limit, l_orig):
    """Broadcast-add pass, fully parallel over (batch, L) tiles."""
    n, c, l_pad = x_p.shape
    itemsize = jnp.dtype(x_p.dtype).itemsize
    out = pl.pallas_call(
        _add_kernel,
        out_shape=jax.ShapeDtypeStruct((n, c, l_pad), x_p.dtype),
        grid_spec=pltpu.PrefetchScalarGridSpec(
            num_scalar_prefetch=0,
            grid=(n // b, l_pad // lt),
            in_specs=[pl.BlockSpec((b, c, lt), lambda i, j: (i, 0, j)),
                      pl.BlockSpec((b, c, 1), lambda i, j: (i, 0, 0))],
            out_specs=pl.BlockSpec((b, c, lt), lambda i, j: (i, 0, j)),
        ),
        compiler_params=pltpu.CompilerParams(
            dimension_semantics=("parallel", "parallel"),
            vmem_limit_bytes=vmem_limit),
        cost_estimate=pl.CostEstimate(
            flops=n * c * l_pad, transcendentals=0,
            bytes_accessed=2 * n * c * l_pad * itemsize + n * c * 4),
    )(x_p, fc3)
    if l_pad != l_orig:
        out = out[:, :, :l_orig]
    return out


def _se_block_fused(x, weight, bias2d, budget, target, vmem_limit):
    """One-pass kernel: read x once, mean + FC + broadcast add, write once (2x traffic)."""
    n, c, l = x.shape
    itemsize = jnp.dtype(x.dtype).itemsize
    b = _pick_batch_block(n, c * l * itemsize, budget, target)
    kernel = functools.partial(_se_fused_kernel, inv_l=1.0 / float(l))
    return pl.pallas_call(
        kernel,
        out_shape=jax.ShapeDtypeStruct((n, c, l), x.dtype),
        grid_spec=pltpu.PrefetchScalarGridSpec(
            num_scalar_prefetch=0,
            grid=(n // b,),
            in_specs=[pl.BlockSpec((b, c, l), lambda i: (i, 0, 0)),
                      pl.BlockSpec((c, c), lambda i: (0, 0)),
                      pl.BlockSpec((1, c), lambda i: (0, 0))],
            out_specs=pl.BlockSpec((b, c, l), lambda i: (i, 0, 0)),
        ),
        compiler_params=pltpu.CompilerParams(
            dimension_semantics=("parallel",),
            vmem_limit_bytes=vmem_limit),
        cost_estimate=pl.CostEstimate(
            flops=2 * n * c * c + 2 * n * c * l, transcendentals=0,
            bytes_accessed=2 * x.size * itemsize
            + weight.size * jnp.dtype(weight.dtype).itemsize + c * 4),
    )(x, weight, bias2d)


def _se_block_two_pass(x, weight, bias2d, budget, target, vmem_limit):
    """Large-slab path: streaming mean+FC kernel, then L-parallel broadcast add."""
    n, c, l = x.shape
    itemsize = jnp.dtype(x.dtype).itemsize
    x_p, l_pad = _pad_l(x)
    lt = _pick_l_tile(l_pad, c * itemsize, min(budget, target))
    b = _pick_batch_block(n, c * lt * itemsize, budget, target)

    kernel = functools.partial(_mean_fc_kernel, inv_l=1.0 / float(l))
    fc3 = pl.pallas_call(
        kernel,
        out_shape=jax.ShapeDtypeStruct((n, c, 1), jnp.float32),
        grid_spec=pltpu.PrefetchScalarGridSpec(
            num_scalar_prefetch=0,
            grid=(n // b, l_pad // lt),            # reduction axis (L) last
            in_specs=[pl.BlockSpec((b, c, lt), lambda i, j: (i, 0, j)),
                      pl.BlockSpec((c, c), lambda i, j: (0, 0)),
                      pl.BlockSpec((1, c), lambda i, j: (0, 0))],
            out_specs=pl.BlockSpec((b, c, 1), lambda i, j: (i, 0, 0)),
        ),
        compiler_params=pltpu.CompilerParams(
            dimension_semantics=("parallel", "arbitrary"),
            vmem_limit_bytes=vmem_limit),
        cost_estimate=pl.CostEstimate(
            flops=n * c * l_pad + 2 * n * c * c, transcendentals=0,
            bytes_accessed=n * c * l_pad * itemsize + n * c * 4),
    )(x_p, weight, bias2d)

    return _run_add(x_p, fc3, b, lt, vmem_limit, l)


def _se_block_split_l(x, weight, bias2d, cap_bytes, vmem_limit):
    """Small-N path for 2-TC chips: L-parallel partial sums, tiny XLA
    combine + FC, then L-parallel broadcast add (both passes shardable)."""
    n, c, l = x.shape
    itemsize = jnp.dtype(x.dtype).itemsize
    x_p, l_pad = _pad_l(x)
    lt = _pick_l_tile(l_pad, n * c * itemsize, cap_bytes, min_tiles=2)
    nl = l_pad // lt

    partial = pl.pallas_call(
        _partial_sum_kernel,
        out_shape=jax.ShapeDtypeStruct((nl, n, c), jnp.float32),
        grid_spec=pltpu.PrefetchScalarGridSpec(
            num_scalar_prefetch=0,
            grid=(nl,),
            in_specs=[pl.BlockSpec((n, c, lt), lambda j: (0, 0, j))],
            out_specs=pl.BlockSpec((1, n, c), lambda j: (j, 0, 0)),
        ),
        compiler_params=pltpu.CompilerParams(
            dimension_semantics=("parallel",),
            vmem_limit_bytes=vmem_limit),
        cost_estimate=pl.CostEstimate(
            flops=n * c * l_pad, transcendentals=0,
            bytes_accessed=n * c * l_pad * itemsize + nl * n * c * 4),
    )(x_p)

    # Tiny combine + FC in XLA (negligible vs the HBM streams).
    mean = jnp.sum(partial, axis=0) * (1.0 / float(l))                    # (N, C) f32
    fc = mean @ weight.astype(jnp.float32).T + bias2d.astype(jnp.float32)
    fc3 = fc[:, :, None]                                                  # (N, C, 1) f32

    b = _pick_batch_block(n, c * lt * itemsize, cap_bytes, cap_bytes)
    return _run_add(x_p, fc3, b, lt, vmem_limit, l)


# ---------------------------------------------------------------------------
# Public wrapper / dispatch.
# ---------------------------------------------------------------------------
def se_block(x, weight, bias, *, block_budget_bytes=None, prefer_l_split=None):
    """SEBlock forward. x: (N, C, L); weight: (C, C) (out, in); bias: (C,)."""
    n, c, l = x.shape
    itemsize = jnp.dtype(x.dtype).itemsize
    vmem_limit, slab_budget, step_target, multi_tc = _tpu_caps()
    if block_budget_bytes is not None:           # manual override (tests / tuning)
        slab_budget = int(block_budget_bytes)
        step_target = min(step_target, slab_budget)
    if prefer_l_split is None:
        prefer_l_split = multi_tc

    bias2d = bias.reshape(1, c)
    slab = c * l * itemsize                      # one batch's (C, L) slab
    fused_ok = slab <= slab_budget
    can_split_batch = n >= 2
    can_split_l = l >= 256

    if fused_ok and (can_split_batch or not (prefer_l_split and can_split_l)):
        return _se_block_fused(x, weight, bias2d, slab_budget, step_target, vmem_limit)
    if prefer_l_split and can_split_l and not can_split_batch:
        # N too small to shard the batch axis across TensorCores: go L-parallel.
        return _se_block_split_l(x, weight, bias2d, step_target, vmem_limit)
    return _se_block_two_pass(x, weight, bias2d, slab_budget, step_target, vmem_limit)


def se_block_ref(x, weight, bias):
    mean = jnp.mean(x, axis=-1)                  # (N, C)
    fc = mean @ weight.T + bias                  # (N, C)
    return x + fc[..., None]


if __name__ == "__main__":
    key = jax.random.PRNGKey(0)
    kx, kw, kb, k2, k3, k4 = jax.random.split(key, 6)

    # Small shapes consistent with SEBlock's (N, C, L) input.
    N, C, L = 2, 8, 16
    bound = 1.0 / (C ** 0.5)
    weight = jax.random.uniform(kw, (C, C), jnp.float32, -bound, bound)
    bias = jax.random.uniform(kb, (C,), jnp.float32, -bound, bound)

    # 1) Fused one-pass path (default dispatch at small shapes).
    x = jax.random.normal(kx, (N, C, L), dtype=jnp.float32)
    out = jax.block_until_ready(se_block(x, weight, bias))
    assert out.shape == (N, C, L)
    assert jnp.allclose(out, se_block_ref(x, weight, bias), atol=1e-5, rtol=1e-5), \
        "fused path mismatch"

    # 2) Two-pass streaming path (force a tiny slab budget), 128-divisible L.
    x2 = jax.random.normal(k2, (N, C, 512), dtype=jnp.float32)
    out2 = jax.block_until_ready(se_block(x2, weight, bias, block_budget_bytes=4096))
    assert jnp.allclose(out2, se_block_ref(x2, weight, bias), atol=1e-5, rtol=1e-5), \
        "two-pass mismatch"

    # 3) Two-pass with non-128-divisible L (exercises the pad/slice hardening).
    x3 = jax.random.normal(k3, (N, C, 200), dtype=jnp.float32)
    out3 = jax.block_until_ready(se_block(x3, weight, bias, block_budget_bytes=4096))
    assert jnp.allclose(out3, se_block_ref(x3, weight, bias), atol=1e-5, rtol=1e-5), \
        "padded two-pass mismatch"

    # 4) Split-L path (N == 1; selected automatically on 2-TC chips).
    x4 = jax.random.normal(k4, (1, C, 512), dtype=jnp.float32)
    out4 = jax.block_until_ready(se_block(x4, weight, bias, prefer_l_split=True))
    assert jnp.allclose(out4, se_block_ref(x4, weight, bias), atol=1e-5, rtol=1e-5), \
        "split-L mismatch"

    print("KERNEL_OK")
</pallas_src>

<mosaic_0001>
module attributes {stable_mosaic.version = 11 : i64} {
  func.func @_se_fused_kernel(%arg0: i32, %arg1: memref<1x8x16xf32, #tpu.memory_space<vmem>>, %arg2: memref<8x8xf32, #tpu.memory_space<vmem>>, %arg3: memref<1x8xf32, #tpu.memory_space<vmem>>, %arg4: memref<1x8x16xf32, #tpu.memory_space<vmem>>) attributes {dimension_semantics = [#tpu.dimension_semantics<parallel>], iteration_bounds = array<i64: 2>, scalar_prefetch = 0 : i64, scratch_operands = 0 : i64, tpu.core_type = #tpu.core_type<tc>, window_params = [{transform_indices = @transform_0, window_bounds = array<i64: 1, 8, 16>}, {pipeline_mode = #tpu.pipeline_mode<synchronous>, transform_indices = @transform_1, window_bounds = array<i64: 8, 8>}, {pipeline_mode = #tpu.pipeline_mode<synchronous>, transform_indices = @transform_2, window_bounds = array<i64: 1, 8>}, {transform_indices = @transform_3, window_bounds = array<i64: 1, 8, 16>}]} {
    %c0 = arith.constant 0 : index
    %c0_0 = arith.constant 0 : index
    %c0_1 = arith.constant 0 : index
    %0 = vector.load %arg1[%c0, %c0_0, %c0_1] : memref<1x8x16xf32, #tpu.memory_space<vmem>>, vector<1x8x16xf32>
    %cst = arith.constant dense<0.000000e+00> : vector<1x8xf32>
    %1 = vector.multi_reduction <add>, %0, %cst [2] : vector<1x8x16xf32> to vector<1x8xf32>
    %cst_2 = arith.constant 6.250000e-02 : f32
    %2 = vector.broadcast %cst_2 : f32 to vector<1x8xf32>
    %3 = arith.mulf %1, %2 : vector<1x8xf32>
    %c0_3 = arith.constant 0 : index
    %c0_4 = arith.constant 0 : index
    %4 = vector.load %arg2[%c0_3, %c0_4] : memref<8x8xf32, #tpu.memory_space<vmem>>, vector<8x8xf32>
    %cst_5 = arith.constant dense<0.000000e+00> : vector<1x8xf32>
    %5 = tpu.matmul %3, %4, %cst_5 {dimension_numbers = #tpu.dot_dimension_numbers<[1], [1], [0], [0], [0, 0, 1, 0], [], []>} : vector<1x8xf32>, vector<8x8xf32>, vector<1x8xf32> -> vector<1x8xf32>
    %c0_6 = arith.constant 0 : index
    %c0_7 = arith.constant 0 : index
    %6 = vector.load %arg3[%c0_6, %c0_7] : memref<1x8xf32, #tpu.memory_space<vmem>>, vector<1x8xf32>
    %7 = arith.addf %5, %6 : vector<1x8xf32>
    %8 = vector.shape_cast %7 : vector<1x8xf32> to vector<1x8x1xf32>
    %9 = vector.broadcast %8 : vector<1x8x1xf32> to vector<1x8x16xf32>
    %10 = arith.addf %0, %9 : vector<1x8x16xf32>
    %c0_8 = arith.constant 0 : index
    %c0_9 = arith.constant 0 : index
    %c0_10 = arith.constant 0 : index
    %11 = vector.load %arg4[%c0_8, %c0_9, %c0_10] : memref<1x8x16xf32, #tpu.memory_space<vmem>>, vector<1x8x16xf32>
    tpu.vector_store %arg4[%c0_8, %c0_9, %c0_10], %10 {strides = array<i32>} : memref<1x8x16xf32, #tpu.memory_space<vmem>>, vector<1x8x16xf32>,
    return
  }
  func.func @transform_0(%arg0: i32) -> (i32, i32, i32) {
    %c0_i32 = arith.constant 0 : i32
    %c0_i32_0 = arith.constant 0 : i32
    %c0_i32_1 = arith.constant 0 : i32
    return %arg0, %c0_i32, %c0_i32_0 : i32, i32, i32
  }
  func.func @transform_1(%arg0: i32) -> (i32, i32) {
    %c0_i32 = arith.constant 0 : i32
    %c0_i32_0 = arith.constant 0 : i32
    %c0_i32_1 = arith.constant 0 : i32
    return %c0_i32, %c0_i32_0 : i32, i32
  }
  func.func @transform_2(%arg0: i32) -> (i32, i32) {
    %c0_i32 = arith.constant 0 : i32
    %c0_i32_0 = arith.constant 0 : i32
    %c0_i32_1 = arith.constant 0 : i32
    return %c0_i32, %c0_i32_0 : i32, i32
  }
  func.func @transform_3(%arg0: i32) -> (i32, i32, i32) {
    %c0_i32 = arith.constant 0 : i32
    %c0_i32_0 = arith.constant 0 : i32
    %c0_i32_1 = arith.constant 0 : i32
    return %arg0, %c0_i32, %c0_i32_0 : i32, i32, i32
  }
}

</mosaic_0001>

<bundles_post_ra>
// kernel: tpu_custom_call.1
= control target key start
LH: loop header
LB: loop body
LE: loop exit
PB: predicated region body
PF: predicated region fallthrough
CT: control target
= control target key end

     0   :  { %8 = vsyncpa [#allocation3], 0  ;;  %s840_s0 = inlined_call_operand.hbm [shape: f32[2,8,16], index: 0, kind: input, shape index: {}]   ;;  %s841_s1 = inlined_call_operand.hbm [shape: f32[8,8], index: 1, kind: input, shape index: {}]   ;;  %s842_s2 = inlined_call_operand.vmem [shape: f32[1,8], index: 2, kind: input, shape index: {}]   ;;  %s843_s3 = inlined_call_operand.hbm [shape: f32[2,8,16], index: 3, kind: output, shape index: {}]  }
   0x1   :  { %10 = vsyncpa [#allocation3 + $0x1], 0 }
   0x2   :  { %11 = vsyncpa [#allocation6], 0 }
   0x3   :  { %12 = vsyncpa [#allocation4], 0 }
   0x4   :  { %14 = vsyncpa [#allocation4 + $0x1], 0  ;;  %s630_s12 = smov 0   ;;  %s632_s13 = smov 0  }
   0x5   :  { %s634_s14 = smov 0   ;;  %s636_s15 = smov 0  }
   0x6 LB: > { %s651_s16 = sadd.s32 4294967295, %s603_s15   ;;  %s393_s17 = sadd.s32 4294967294, %s603_s15   ;;  %s603_s15 = sphi %s636_s15, %s867_s15   ;;  %s599_s14 = sphi %s634_s14, %s866_s14   ;;  %s595_s13 = sphi %s632_s13, %s865_s13   ;;  %s591_s12 = sphi %s630_s12, %s864_s12  }
   0x7   : > { %p40_p0 = scmp.ne.s32.totalorder %s595_s13, %s591_s12  ;;  %p844_p1 = scmp.eq.s32.totalorder %s651_s16, 0 }
   0x8   : > { %p112_p3 = scmp.eq.s32.totalorder %s393_s17, 1  ;;  %p394_p5 = scmp.ge.s32.totalorder %s603_s15, 1 }
   0x9   : > { %p660_p4 = por %p844_p1, %p40_p0  ;;  %p119_p7 = scmp.lt.s32.totalorder %s603_s15, 3 }
   0xa   : > { %p665_p6 = por %p112_p3, %p40_p0  ;;  %s605_s21 = smov [#allocation5]  }
   0xb   : > { %s847_s18 = scalar_select %p660_p4, 1, 0 }
   0xc   : > { %s848_s19 = scalar_select %p665_p6, 1, 0 }
   0xd   : > { %p670_p8 = pnand %p394_p5, %p119_p7  ;;  %s132_s22 = sshll.u32 %s605_s21, 4  ;;  %s133_s22 = int_to_ptr.vmem [resolvable:$true] %s132_s22 }
   0xe   : > { %s678_s23 = sadd.s32 1, %s603_s15   ;;  %s27_s27 = sadd.s32 1, %s599_s14 }
   0xf   : > { %s849_s20 = scalar_select %p670_p8, 1, 0 }
  0x10   : > { %p424_p10 = pneg %p670_p8  ;;  %s24_s25 = ssub.s32 %s603_s15, %s678_s23 }
  0x11   : > { %p688_p12 = scmp.eq.s32.totalorder %s24_s25, 0  ;;  %s475_s30 = scalar_lea.hbm %s841_s1, 128 }
  0x12   : > { %p682_p11 = pnand %p424_p10, %p844_p1  ;;  %p476_p0 = scmp.ne.s32.totalorder %s841_s1, %s475_s30 }
  0x13   : > { %s851_s26 = scalar_select %p688_p12, 1, 0 }
  0x14   : > { %p477_p3 = pneg %p682_p11  ;;  %p482_p10 = scmp.lt.u32.totalorder %s475_s30, %s841_s1 }
  0x16   : > { %p478_p5 = pnand %p477_p3, %p476_p0 }
  0x18   : > { %p479_p7 = pneg %p478_p5 }
  0x1a   : > { %p484_p9 = pnand %p482_p10, %p479_p7 }
  0x1c   : > { %487 = shalt.err (!%p484_p9)
}
  0x1d   : > { %s488_s8 = scalar_lea.vmem %s133_s22, 128  ;;  %p496_p6 = scmp.lt.s32.totalorder %s133_s22, %s133_s22 }
  0x1e   : > { %p489_p1 = scmp.ne.s32.totalorder %s133_s22, %s488_s8  ;;  %p497_p4 = scmp.lt.s32.totalorder %s488_s8, %s488_s8 }
  0x20   : > { %p491_p2 = pnand %p489_p1, %p477_p3  ;;  %p498_p8 = por %p497_p4, %p496_p6 }
  0x22   : > { %p492_p13 = pneg %p491_p2 }
  0x24   : > { %p499_p12 = pnand %p498_p8, %p492_p13 }
  0x26   : > { %502 = shalt.err (!%p499_p12)
}
  0x27   : > { %427 = dma.hbm_to_vmem [thread:$0]  (!%p682_p11), %s841_s1, 128, %s133_s22, [#allocation6]  }
  0x28   : > { %p852_p1 = scmp.ne.s32.totalorder %s851_s26, 0  ;;  %p35_p2 = scmp.eq.s32.totalorder %s603_s15, 0 }
  0x29   : > { %p853_p4 = scmp.ne.s32.totalorder %s599_s14, %s595_s13  ;;  %p854_p6 = scmp.eq.s32.totalorder %s651_s16, 1 }
  0x2a   : > { %s714_s11 = scalar_select %p852_p1, %s599_s14, %s27_s27  }
  0x2b   : > { %p722_p8 = por %p854_p6, %p853_p4  ;;  %p437_p9 = scmp.lt.s32.totalorder %s603_s15, 2 }
  0x2c   : > { %s146_s21 = sand.u32 1, %s599_s14   ;;  %p856_p12 = pmov %p853_p4 }
  0x2d   : > { %s397_s24 = sshll.u32 %s146_s21, 3  ;;  %s398_s25 = sshll.u32 %s603_s15, 7 }
  0x2e   : > { %p36_p13 = por %p35_p2, %p856_p12  ;;  %s735_s22 = scalar_lea.hbm %s840_s0, %s398_s25 }
  0x2f   : > { %s150_s26 = scalar_lea.vmem [#allocation2], %s397_s24  ;;  %s147_s4 = scalar_lea.sflag [#allocation3], %s146_s21 }
  0x30   : > { %s157_s27 = sshll.u32 %s150_s26, 4  ;;  %p737_p11 = pnand %p437_p9, %p36_p13  ;;  %s741_s27 = int_to_ptr.vmem [resolvable:$true] %s157_s27 }
  0x31   : > { %s503_s5 = scalar_lea.hbm %s735_s22, 128  ;;  %s508_s8 = scalar_lea.hbm %s840_s0, 256 }
  0x32   : > { %p504_p0 = scmp.ne.s32.totalorder %s735_s22, %s503_s5  ;;  %p505_p3 = pneg %p737_p11 }
  0x33   : > { %p509_p10 = scmp.lt.u32.totalorder %s735_s22, %s840_s0  ;;  %p510_p1 = scmp.lt.u32.totalorder %s508_s8, %s503_s5 }
  0x34   : > { %p506_p5 = pnand %p505_p3, %p504_p0  ;;  %p512_p4 = scmp.lt.u32.totalorder %s503_s5, %s735_s22 }
  0x35   : > { %p511_p2 = por %p510_p1, %p509_p10 }
  0x36   : > { %p507_p7 = pneg %p506_p5 }
  0x37   : > { %p513_p6 = por %p512_p4, %p511_p2 }
  0x39   : > { %p514_p9 = pnand %p513_p6, %p507_p7 }
  0x3b   : > { %517 = shalt.err (!%p514_p9)
}
  0x3c   : > { %s518_s21 = scalar_lea.vmem %s741_s27, 128  ;;  %s606_s24 = smov [#allocation2]  }
  0x3d   : > { %p519_p12 = scmp.ne.s32.totalorder %s741_s27, %s518_s21  ;;  %s523_s25 = sshll.u32 %s606_s24, 4  ;;  %s524_s25 = int_to_ptr.vmem [resolvable:$false] %s523_s25 }
  0x3e   : > { %s525_s28 = scalar_lea.vmem %s524_s25, 256  ;;  %p526_p5 = scmp.lt.s32.totalorder %s741_s27, %s524_s25 }
  0x3f   : > { %p521_p13 = pnand %p519_p12, %p505_p3  ;;  %p527_p10 = scmp.lt.s32.totalorder %s525_s28, %s518_s21 }
  0x41   : > { %p522_p0 = pneg %p521_p13  ;;  %p528_p1 = por %p527_p10, %p526_p5 }
  0x43   : > { %p529_p2 = pnand %p528_p1, %p522_p0 }
  0x45   : > { %532 = shalt.err (!%p529_p2)
}
  0x46   : > { %431 = dma.hbm_to_vmem [thread:$0]  (!%p737_p11), %s735_s22, 128, %s741_s27, %s147_s4  }
  0x47   : > { %p858_p7 = scmp.ne.s32.totalorder %s849_s20, 0 }
  0x48   : > { %s771_s29 = sand.u32 (!%p858_p7), 1, %s595_s13   ;;  %p859_p3 = scmp.ne.s32.totalorder (!%p858_p7), %s847_s18, 0 }
  0x49   : > { %166 = sbr.rel (%p858_p7) target bundleno = 579 (0x243), region = 32  ;;  %s400_s26 = sshll.u32 (!%p858_p7), %s771_s29, 3 }
  0x4a   : > { %s169_s5 = scalar_lea.sflag (!%p858_p7), [#allocation3], %s771_s29  ;;  %s172_s6 = scalar_lea.vmem (!%p858_p7), [#allocation2], %s400_s26 }
  0x50   : > { %578 = dma.done.wait (%p859_p3), %s169_s5, 128  }
  0x51   : > { %580 = vsyncadd (%p859_p3), %s169_s5, 4294967168  ;;  %p860_p11 = scmp.eq.s32.totalorder %s651_s16, 0 }
  0x53   : > { %582 = dma.done.wait (%p860_p11), [#allocation6], 128   ;;  %p861_p4 = pmov %p860_p11 }
  0x54   : > { %vm200_vm0 = vcmask 130048   ;;  %v199_v0 = vld [vmem:[%s172_s6] sm:$0xff]  ;;  %v607_v2 = vmov 0.0   ;;  %v205_v3 = vld [vmem:[#allocation5] sm:$0xff]  ;;  %vm214_vm1 = vcmask 64512   ;;  %vm608_vm2 = vmmov 0  }
  0x55   : > { %584 = vsyncadd (%p861_p4), [#allocation6], 4294967168  ;;  %v201_v1 = vsel %vm200_vm0, %v199_v0, 0.0  ;;  %411 = vmatprep.subr.mxu0 %v607_v2  ;;  %413 = vmatprep.mubr.msk.f32.mxu0 %vm608_vm2, %v607_v2  ;;  %v208_v4 = vlaneseq  ;;  %v206_v11 = vld [vmem:[%s842_s2] sm:$0x1]  ;;  %s406_s22 = sshll.u32 %s651_s16, 7 }
  0x56   : > { %202 = vadd.xlane.f32.xlu0 %v201_v1  ;;  %412 = vmatpush3.xpose.msk.msra.mxu0 %vm214_vm1, %v205_v3  ;;  %s198_s27 = scalar_lea.vmem [#allocation7], %s400_s26  ;;  %s795_s8 = scalar_lea.hbm %s843_s3, %s406_s22 }
  0x57   : > { %v209_v5 = vand.u32 127, %v208_v4  ;;  %v211_v6 = vshrl.u32 %v208_v4, 7  ;;  %s313_s30 = sshll.u32 %s198_s27, 4  ;;  %s300_s9 = scalar_lea.sflag [#allocation4], %s771_s29  ;;  %s797_s30 = int_to_ptr.vmem [resolvable:$true] %s313_s30 }
  0x58   : > { %s533_s10 = scalar_lea.vmem %s797_s30, 128  ;;  %s609_s16 = smov [#allocation7]  }
  0x59   : > { %v212_v7 = vsub.s32 %v209_v5, %v211_v6  ;;  %v292_v12 = vsub.s32 0, %v211_v6  ;;  %p534_p6 = scmp.ne.s32.totalorder %s797_s30, %s533_s10  ;;  %s537_s21 = sshll.u32 %s609_s16, 4  ;;  %s538_s21 = int_to_ptr.vmem [resolvable:$false] %s537_s21 }
  0x5a   : > { %s539_s24 = scalar_lea.vmem %s538_s21, 256  ;;  %p540_p13 = scmp.lt.s32.totalorder %s797_s30, %s538_s21 }
  0x5b   : > { %p535_p9 = pnand %p534_p6, %p722_p8  ;;  %p541_p0 = scmp.lt.s32.totalorder %s539_s24, %s533_s10 }
  0x5d   : > { %p536_p12 = pneg %p535_p9  ;;  %p542_p5 = por %p541_p0, %p540_p13 }
  0x5f   : > { %p543_p10 = pnand %p542_p5, %p536_p12 }
  0xe3   : > { %v203_v8 = vpop.xlane.xlu0 %202 }
  0xe4   : > { %v204_v9 = vmul.f32 0.0625, %v203_v8 }
  0xe6   : > { %v213_v10 = vrot.slane %v204_v9, %v212_v7 }
  0xe8   : > { %414 = vmatmul.mubr.msk.f32.vlgmr.msra.gmra.mrb[0].mxu0 %vm214_vm1, %v213_v10 }
 0x1bb   : > { %v286_v13 = vpop.f32.mrb[0].mxu0 }
 0x1bc   : > { %v287_v14 = vadd.f32 %v286_v13, %v206_v11  ;;  %v415_v15 = vpop.f32.mrb[1].mxu0 }
 0x1be   : > { %v293_v16 = vrot.slane %v287_v14, %v292_v12 }
 0x1c0   : > { %295 = vbcast.lane.b32.xlu0 %v293_v16, 256 }
 0x232   : > { %v296_v17 = vpop.permute.xlu0 %295 }
 0x233   : > { %v297_v18 = vadd.f32 %v296_v17, %v199_v0 }
 0x235   : > { %298 = vst.msk [vmem:[%s198_s27] sm:$0xff] %vm200_vm0, %v297_v18 }
 0x236   : > { %546 = shalt.err (!%p543_p10)
}
 0x237   : > { %s547_s25 = scalar_lea.hbm %s795_s8, 128  ;;  %s551_s26 = scalar_lea.hbm %s843_s3, 256 }
 0x238   : > { %p548_p1 = scmp.ne.s32.totalorder %s795_s8, %s547_s25  ;;  %p552_p3 = scmp.lt.u32.totalorder %s795_s8, %s843_s3 }
 0x239   : > { %p553_p11 = scmp.lt.u32.totalorder %s551_s26, %s547_s25  ;;  %p555_p6 = scmp.lt.u32.totalorder %s547_s25, %s795_s8 }
 0x23a   : > { %p549_p2 = pnand %p548_p1, %p722_p8 }
 0x23b   : > { %p554_p4 = por %p553_p11, %p552_p3 }
 0x23c   : > { %p550_p7 = pneg %p549_p2 }
 0x23d   : > { %p556_p9 = por %p555_p6, %p554_p4 }
 0x23f   : > { %p557_p12 = pnand %p556_p9, %p550_p7 }
 0x241   : > { %560 = shalt.err (!%p557_p12)
}
 0x242   : > { %422 = dma.vmem_to_hbm [thread:$0]  (%p722_p8), %s797_s30, 128, %s795_s8, %s300_s9  }
 0x243 PF: > { %s325_s18 = sand.u32 1, %s591_s12   ;;  %p862_p13 = scmp.ne.s32.totalorder %s848_s19, 0 }
 0x244   : > { %p863_p0 = scmp.ge.s32.totalorder %s603_s15, 2  ;;  %s326_s20 = scalar_lea.sflag [#allocation4], %s325_s18 }
 0x246   : > { %p433_p5 = pnand %p863_p0, %p862_p13 }
 0x248   : > { %586 = dma.done.wait (!%p433_p5), %s326_s20, 128  }
 0x249   : > { %588 = vsyncadd (!%p433_p5), %s326_s20, 4294967168  ;;  %p17_p10 = scmp.ge.s32.totalorder %s678_s23, 4   ;;  %s864_s12 = smov %s595_s13 }
 0x24a   : > { %s865_s13 = smov %s599_s14  ;;  %s866_s14 = smov %s714_s11 }
 0x24b   : > { %s867_s15 = smov %s678_s23  ;;  %19 = sbr.rel (!%p17_p10) target bundleno = 6 (0x6), region = 81 }
 0x252   :  { %331 = vsyncpa [#allocation3], 1 }
 0x253   :  { %333 = vsyncpa [#allocation3 + $0x1], 1 }
 0x254   :  { %334 = vsyncpa [#allocation6], 1 }
 0x255   :  { %335 = vsyncpa [#allocation4], 1 }
 0x256   :  { %337 = vsyncpa [#allocation4 + $0x1], 1 }

</bundles_post_ra>
